<compile_context>
chip_gen: v7x
topology: tpu7x:2x2x1
jax: 0.10.0
libtpu: 0.0.40
codegen_flags: <defaults>
</compile_context>

<pallas_src>
import jax
import jax.numpy as jnp
import numpy as np
from jax.experimental import pallas as pl
from jax.experimental.pallas import tpu as pltpu


def _round_up(x: int, m: int) -> int:
    return (x + m - 1) // m * m


def _make_kernel(n_trunk: int, relu_flags):
    """Kernel closed over the (static) trunk depth and per-layer ReLU flags."""

    def kernel(*refs):
        # refs = [x, (W,b)*n_trunk, W_heads, b_heads, mask_neg, mask_keep, out]
        idx = 0
        h = refs[idx][...]            # bf16 activation tile, fed straight to MXU
        idx += 1

        # ---- shared trunk (layer 0 already algebraically fused into layer 1) ----
        for li in range(n_trunk):
            w = refs[idx][...]        # bf16 weight (cast once in prepare step)
            b = refs[idx + 1][...]    # f32 bias
            idx += 2
            h = jnp.dot(h, w, preferred_element_type=jnp.float32) + b
            if relu_flags[li]:
                h = jnp.maximum(h, 0.0)
            h = h.astype(w.dtype)     # back to bf16 for the next MXU push

        w_heads = refs[idx][...]      # (h_last, N_pad) bf16, fused 4 heads
        b_heads = refs[idx + 1][...]  # (1, N_pad) f32
        mask_neg = refs[idx + 2][...]   # (1, N_pad) f32: 0 on direction cols, -1e30 else
        mask_keep = refs[idx + 3][...]  # (1, N_pad) f32: 0 on direction cols,  1   else
        idx += 4
        out_ref = refs[idx]           # (TB, N_pad) slab

        # ---- single fused head matmul ----
        fused = jnp.dot(h, w_heads, preferred_element_type=jnp.float32) + b_heads

        # ---- masked softmax over direction columns (precomputed masks) ----
        masked = fused + mask_neg                    # -1e30 on non-direction cols
        m = jnp.max(masked, axis=-1, keepdims=True)
        e = jnp.exp(masked - m)                      # exactly 0 on non-direction cols
        denom = jnp.sum(e, axis=-1, keepdims=True)
        soft = e * pl.reciprocal(denom, approx=True)

        # direction cols -> softmax; alpha/beta/value cols pass through (soft==0 there).
        out_ref[...] = (soft + fused * mask_keep).astype(out_ref.dtype)

    return kernel


def prepare_ppo_params(shared_params, head_params, *, matmul_dtype=jnp.bfloat16):
    """One-time parameter prep (hoisted out of the per-forward path).

    shared_params: list of (W (in,out), b (1,out)) for the shared Linear layers
    head_params:   dict 'direction'/'alpha'/'beta'/'value' -> (W (in,out), b (1,out))
    """
    n_shared = len(shared_params)
    out_dim = head_params["direction"][0].shape[1]

    # ---- fuse the activation-free first Linear into the second (f32 algebra) ----
    trunk = []
    relu_flags = []
    if n_shared >= 2:
        w0, b0 = shared_params[0]
        w1, b1 = shared_params[1]
        w01 = w0.astype(jnp.float32) @ w1.astype(jnp.float32)
        b01 = b0.astype(jnp.float32) @ w1.astype(jnp.float32) + b1.astype(jnp.float32)
        trunk.append((w01, b01))
        relu_flags.append(True)       # layer 1 had ReLU after it
        rest = shared_params[2:]
    else:
        trunk.append(shared_params[0])
        relu_flags.append(False)      # lone first Linear has no activation
        rest = []
    for (w, b) in rest:
        trunk.append((w, b))
        relu_flags.append(True)

    # ---- fuse the four head weights/biases into one lane-padded block ----
    wd, bd = head_params["direction"]
    wa, ba = head_params["alpha"]
    wb, bb = head_params["beta"]
    wv, bv = head_params["value"]
    w_heads = jnp.concatenate([wd, wa, wb, wv], axis=1)   # (h_last, 3*out+1)
    b_heads = jnp.concatenate([bd, ba, bb, bv], axis=1)   # (1, 3*out+1)
    n_heads = w_heads.shape[1]
    n_pad = _round_up(n_heads, 128)                       # lane-dense output slab
    if n_pad != n_heads:
        w_heads = jnp.pad(w_heads, ((0, 0), (0, n_pad - n_heads)))
        b_heads = jnp.pad(b_heads, ((0, 0), (0, n_pad - n_heads)))

    # ---- precomputed softmax masks (replace per-step iota/compare/where) ----
    col = np.arange(n_pad)
    is_dir = col < out_dim
    mask_neg = jnp.asarray(np.where(is_dir, 0.0, -1e30)[None, :], jnp.float32)
    mask_keep = jnp.asarray(np.where(is_dir, 0.0, 1.0)[None, :], jnp.float32)

    trunk = [(w.astype(matmul_dtype), b.astype(jnp.float32)) for (w, b) in trunk]
    return {
        "trunk": trunk,
        "relu_flags": tuple(relu_flags),
        "w_heads": w_heads.astype(matmul_dtype),
        "b_heads": b_heads.astype(jnp.float32),
        "mask_neg": mask_neg,
        "mask_keep": mask_keep,
        "out_dim": out_dim,
        "n_pad": n_pad,
        "matmul_dtype": matmul_dtype,
    }


def ppo_network_forward(x, params, *, block_b: int = 1024, out_dtype=jnp.float32):
    """Full PPONetwork forward in one Pallas kernel.

    x:      (B, input_dim) array (any float dtype; cast to params' matmul dtype)
    params: output of prepare_ppo_params()
    out_dtype: jnp.float32 (default) or jnp.bfloat16 to halve the slab writeback
               on HBM-bound v5e/v6e (check downstream tolerance for value head).
    """
    B, in_dim = x.shape
    trunk = params["trunk"]
    relu_flags = params["relu_flags"]
    w_heads, b_heads = params["w_heads"], params["b_heads"]
    mask_neg, mask_keep = params["mask_neg"], params["mask_keep"]
    out_dim, n_pad = params["out_dim"], params["n_pad"]
    matmul_dtype = params["matmul_dtype"]

    # ---- batch tiling: multiples of 16 (bf16 sublane pairs); guarantee >=2 ----
    # grid steps when the batch allows it so both v7x TensorCores get work.
    min_tile = 16
    block_b = _round_up(max(block_b, min_tile), min_tile)
    b_rounded = _round_up(B, min_tile)
    tb = min(block_b, b_rounded)
    if tb == b_rounded and b_rounded >= 2 * min_tile:
        tb = _round_up((b_rounded + 1) // 2, min_tile)
    b_pad = _round_up(B, tb)

    # Pre-cast x to bf16 (halves input DMA; MXU consumes bf16, accumulates f32).
    x = x.astype(matmul_dtype)
    if b_pad != B:
        x = jnp.pad(x, ((0, b_pad - B), (0, 0)))
    grid = (b_pad // tb,)

    # ---- inputs & specs: x tiled over batch, weights/masks pinned resident ----
    const2d = lambda i: (0, 0)
    inputs = [x]
    in_specs = [pl.BlockSpec((tb, in_dim), lambda i: (i, 0))]
    for w, b in trunk:
        inputs += [w, b]
        in_specs += [pl.BlockSpec(w.shape, const2d), pl.BlockSpec(b.shape, const2d)]
    inputs += [w_heads, b_heads, mask_neg, mask_keep]
    in_specs += [pl.BlockSpec(w_heads.shape, const2d),
                 pl.BlockSpec(b_heads.shape, const2d),
                 pl.BlockSpec(mask_neg.shape, const2d),
                 pl.BlockSpec(mask_keep.shape, const2d)]

    out_shape = jax.ShapeDtypeStruct((b_pad, n_pad), out_dtype)
    out_spec = pl.BlockSpec((tb, n_pad), lambda i: (i, 0))

    slab = pl.pallas_call(
        _make_kernel(len(trunk), relu_flags),
        grid=grid,
        in_specs=in_specs,
        out_specs=out_spec,
        out_shape=out_shape,
        compiler_params=pltpu.CompilerParams(
            dimension_semantics=("parallel",)),   # 2-TC sharding on v7x, no-op elsewhere
    )(*inputs)

    # One lax.slice per head straight out of the slab (no slab[:B] intermediate).
    def head(c0, c1):
        return jax.lax.slice(slab, (0, c0), (B, c1))

    return {
        "direction": head(0, out_dim),
        "alpha": head(out_dim, 2 * out_dim),
        "beta": head(2 * out_dim, 3 * out_dim),
        "value": head(3 * out_dim, 3 * out_dim + 1),
    }


def _init_linear(key, fan_in, fan_out):
    """PyTorch-style Linear init: U(-1/sqrt(fan_in), 1/sqrt(fan_in))."""
    kw, kb = jax.random.split(key)
    bound = 1.0 / np.sqrt(fan_in)
    w = jax.random.uniform(kw, (fan_in, fan_out), jnp.float32, -bound, bound)
    b = jax.random.uniform(kb, (1, fan_out), jnp.float32, -bound, bound)
    return w, b


def _reference_forward(x, shared_params, head_params):
    """Plain-JAX f32 reference with identical module semantics."""
    h = x
    for li, (w, b) in enumerate(shared_params):
        h = h @ w + b
        if li >= 1:
            h = jnp.maximum(h, 0.0)
    wd, bd = head_params["direction"]
    wa, ba = head_params["alpha"]
    wb, bb = head_params["beta"]
    wv, bv = head_params["value"]
    logits = h @ wd + bd
    return {
        "direction": jax.nn.softmax(logits, axis=-1),
        "alpha": h @ wa + ba,
        "beta": h @ wb + bb,
        "value": h @ wv + bv,
    }


if __name__ == "__main__":
    # Small, module-consistent shapes; batch chosen so the grid splits into 2
    # tiles (exercises the v7x two-TensorCore "parallel" path).
    batch = 64
    input_dim = 32
    output_dim = 8
    hidden_dims = [128, 64, 32]

    key = jax.random.PRNGKey(0)
    keys = jax.random.split(key, 16)

    # Shared trunk params.
    dims = [input_dim] + hidden_dims
    shared_params = []
    for i in range(len(dims) - 1):
        shared_params.append(_init_linear(keys[i], dims[i], dims[i + 1]))

    # Head params.
    kidx = len(dims) - 1
    head_params = {
        "direction": _init_linear(keys[kidx + 0], hidden_dims[-1], output_dim),
        "alpha": _init_linear(keys[kidx + 1], hidden_dims[-1], output_dim),
        "beta": _init_linear(keys[kidx + 2], hidden_dims[-1], output_dim),
        "value": _init_linear(keys[kidx + 3], hidden_dims[-1], 1),
    }

    x = jax.random.normal(keys[-1], (batch, input_dim), jnp.float32)
    ref = _reference_forward(x, shared_params, head_params)

    # One-time parameter prep (fusion, head concat/pad, bf16 casts, masks).
    params = prepare_ppo_params(shared_params, head_params)

    # --- default f32 output slab ---
    out = ppo_network_forward(x, params)
    out = jax.block_until_ready(out)
    for k in ("direction", "alpha", "beta", "value"):
        np.testing.assert_allclose(np.asarray(out[k]), np.asarray(ref[k]),
                                   rtol=2e-2, atol=2e-2)

    # --- bf16 output slab (halves HBM writeback on v5e/v6e) ---
    out_bf16 = ppo_network_forward(x, params, out_dtype=jnp.bfloat16)
    out_bf16 = jax.block_until_ready(out_bf16)
    for k in ("direction", "alpha", "beta", "value"):
        np.testing.assert_allclose(np.asarray(out_bf16[k].astype(jnp.float32)),
                                   np.asarray(ref[k]), rtol=5e-2, atol=5e-2)

    print("KERNEL_OK")
</pallas_src>

<mosaic_0001>
module attributes {stable_mosaic.version = 11 : i64} {
  func.func @kernel(%arg0: i32, %arg1: memref<32x32xbf16, #tpu.memory_space<vmem>>, %arg2: memref<32x64xbf16, #tpu.memory_space<vmem>>, %arg3: memref<1x64xf32, #tpu.memory_space<vmem>>, %arg4: memref<64x32xbf16, #tpu.memory_space<vmem>>, %arg5: memref<1x32xf32, #tpu.memory_space<vmem>>, %arg6: memref<32x128xbf16, #tpu.memory_space<vmem>>, %arg7: memref<1x128xf32, #tpu.memory_space<vmem>>, %arg8: memref<1x128xf32, #tpu.memory_space<vmem>>, %arg9: memref<1x128xf32, #tpu.memory_space<vmem>>, %arg10: memref<32x128xf32, #tpu.memory_space<vmem>>) attributes {dimension_semantics = [#tpu.dimension_semantics<parallel>], iteration_bounds = array<i64: 2>, scalar_prefetch = 0 : i64, scratch_operands = 0 : i64, tpu.core_type = #tpu.core_type<tc>, window_params = [{transform_indices = @transform_0, window_bounds = array<i64: 32, 32>}, {pipeline_mode = #tpu.pipeline_mode<synchronous>, transform_indices = @transform_1, window_bounds = array<i64: 32, 64>}, {pipeline_mode = #tpu.pipeline_mode<synchronous>, transform_indices = @transform_2, window_bounds = array<i64: 1, 64>}, {pipeline_mode = #tpu.pipeline_mode<synchronous>, transform_indices = @transform_3, window_bounds = array<i64: 64, 32>}, {pipeline_mode = #tpu.pipeline_mode<synchronous>, transform_indices = @transform_4, window_bounds = array<i64: 1, 32>}, {pipeline_mode = #tpu.pipeline_mode<synchronous>, transform_indices = @transform_5, window_bounds = array<i64: 32, 128>}, {pipeline_mode = #tpu.pipeline_mode<synchronous>, transform_indices = @transform_6, window_bounds = array<i64: 1, 128>}, {pipeline_mode = #tpu.pipeline_mode<synchronous>, transform_indices = @transform_7, window_bounds = array<i64: 1, 128>}, {pipeline_mode = #tpu.pipeline_mode<synchronous>, transform_indices = @transform_8, window_bounds = array<i64: 1, 128>}, {transform_indices = @transform_9, window_bounds = array<i64: 32, 128>}]} {
    %c0 = arith.constant 0 : index
    %c0_0 = arith.constant 0 : index
    %0 = vector.load %arg1[%c0, %c0_0] : memref<32x32xbf16, #tpu.memory_space<vmem>>, vector<32x32xbf16>
    %c0_1 = arith.constant 0 : index
    %c0_2 = arith.constant 0 : index
    %1 = vector.load %arg2[%c0_1, %c0_2] : memref<32x64xbf16, #tpu.memory_space<vmem>>, vector<32x64xbf16>
    %c0_3 = arith.constant 0 : index
    %c0_4 = arith.constant 0 : index
    %2 = vector.load %arg3[%c0_3, %c0_4] : memref<1x64xf32, #tpu.memory_space<vmem>>, vector<1x64xf32>
    %cst = arith.constant dense<0.000000e+00> : vector<32x64xf32>
    %3 = tpu.matmul %0, %1, %cst {dimension_numbers = #tpu.dot_dimension_numbers<[1], [0], [0], [1], [0, 0, 1, 1], [], []>} : vector<32x32xbf16>, vector<32x64xbf16>, vector<32x64xf32> -> vector<32x64xf32>
    %4 = vector.broadcast %2 : vector<1x64xf32> to vector<32x64xf32>
    %5 = arith.addf %3, %4 : vector<32x64xf32>
    %cst_5 = arith.constant 0.000000e+00 : f32
    %6 = vector.broadcast %cst_5 : f32 to vector<32x64xf32>
    %7 = arith.maximumf %5, %6 : vector<32x64xf32>
    %8 = arith.truncf %7 : vector<32x64xf32> to vector<32x64xbf16>
    %c0_6 = arith.constant 0 : index
    %c0_7 = arith.constant 0 : index
    %9 = vector.load %arg4[%c0_6, %c0_7] : memref<64x32xbf16, #tpu.memory_space<vmem>>, vector<64x32xbf16>
    %c0_8 = arith.constant 0 : index
    %c0_9 = arith.constant 0 : index
    %10 = vector.load %arg5[%c0_8, %c0_9] : memref<1x32xf32, #tpu.memory_space<vmem>>, vector<1x32xf32>
    %cst_10 = arith.constant dense<0.000000e+00> : vector<32x32xf32>
    %11 = tpu.matmul %8, %9, %cst_10 {dimension_numbers = #tpu.dot_dimension_numbers<[1], [0], [0], [1], [0, 0, 1, 1], [], []>} : vector<32x64xbf16>, vector<64x32xbf16>, vector<32x32xf32> -> vector<32x32xf32>
    %12 = vector.broadcast %10 : vector<1x32xf32> to vector<32x32xf32>
    %13 = arith.addf %11, %12 : vector<32x32xf32>
    %cst_11 = arith.constant 0.000000e+00 : f32
    %14 = vector.broadcast %cst_11 : f32 to vector<32x32xf32>
    %15 = arith.maximumf %13, %14 : vector<32x32xf32>
    %16 = arith.truncf %15 : vector<32x32xf32> to vector<32x32xbf16>
    %c0_12 = arith.constant 0 : index
    %c0_13 = arith.constant 0 : index
    %17 = vector.load %arg6[%c0_12, %c0_13] : memref<32x128xbf16, #tpu.memory_space<vmem>>, vector<32x128xbf16>
    %c0_14 = arith.constant 0 : index
    %c0_15 = arith.constant 0 : index
    %18 = vector.load %arg7[%c0_14, %c0_15] : memref<1x128xf32, #tpu.memory_space<vmem>>, vector<1x128xf32>
    %c0_16 = arith.constant 0 : index
    %c0_17 = arith.constant 0 : index
    %19 = vector.load %arg8[%c0_16, %c0_17] : memref<1x128xf32, #tpu.memory_space<vmem>>, vector<1x128xf32>
    %c0_18 = arith.constant 0 : index
    %c0_19 = arith.constant 0 : index
    %20 = vector.load %arg9[%c0_18, %c0_19] : memref<1x128xf32, #tpu.memory_space<vmem>>, vector<1x128xf32>
    %cst_20 = arith.constant dense<0.000000e+00> : vector<32x128xf32>
    %21 = tpu.matmul %16, %17, %cst_20 {dimension_numbers = #tpu.dot_dimension_numbers<[1], [0], [0], [1], [0, 0, 1, 1], [], []>} : vector<32x32xbf16>, vector<32x128xbf16>, vector<32x128xf32> -> vector<32x128xf32>
    %22 = vector.broadcast %18 : vector<1x128xf32> to vector<32x128xf32>
    %23 = arith.addf %21, %22 : vector<32x128xf32>
    %24 = vector.broadcast %19 : vector<1x128xf32> to vector<32x128xf32>
    %25 = arith.addf %23, %24 : vector<32x128xf32>
    %cst_21 = arith.constant dense<0xFF800000> : vector<32xf32>
    %26 = vector.multi_reduction <maximumf>, %25, %cst_21 [1] : vector<32x128xf32> to vector<32xf32>
    %27 = vector.shape_cast %26 : vector<32xf32> to vector<32x1xf32>
    %28 = vector.broadcast %27 : vector<32x1xf32> to vector<32x128xf32>
    %29 = arith.subf %25, %28 : vector<32x128xf32>
    %30 = math.exp %29 : vector<32x128xf32>
    %cst_22 = arith.constant dense<0.000000e+00> : vector<32xf32>
    %31 = vector.multi_reduction <add>, %30, %cst_22 [1] : vector<32x128xf32> to vector<32xf32>
    %32 = vector.shape_cast %31 : vector<32xf32> to vector<32x1xf32>
    %33 = tpu.reciprocal %32 {approx = true} : vector<32x1xf32> -> vector<32x1xf32>
    %34 = vector.broadcast %33 : vector<32x1xf32> to vector<32x128xf32>
    %35 = arith.mulf %30, %34 : vector<32x128xf32>
    %36 = vector.broadcast %20 : vector<1x128xf32> to vector<32x128xf32>
    %37 = arith.mulf %23, %36 : vector<32x128xf32>
    %38 = arith.addf %35, %37 : vector<32x128xf32>
    %c0_23 = arith.constant 0 : index
    %c0_24 = arith.constant 0 : index
    %39 = vector.load %arg10[%c0_23, %c0_24] : memref<32x128xf32, #tpu.memory_space<vmem>>, vector<32x128xf32>
    tpu.vector_store %arg10[%c0_23, %c0_24], %38 {strides = array<i32>} : memref<32x128xf32, #tpu.memory_space<vmem>>, vector<32x128xf32>,
    return
  }
  func.func @transform_0(%arg0: i32) -> (i32, i32) {
    %c0_i32 = arith.constant 0 : i32
    %c0_i32_0 = arith.constant 0 : i32
    return %arg0, %c0_i32 : i32, i32
  }
  func.func @transform_1(%arg0: i32) -> (i32, i32) {
    %c0_i32 = arith.constant 0 : i32
    %c0_i32_0 = arith.constant 0 : i32
    %c0_i32_1 = arith.constant 0 : i32
    return %c0_i32, %c0_i32_0 : i32, i32
  }
  func.func @transform_2(%arg0: i32) -> (i32, i32) {
    %c0_i32 = arith.constant 0 : i32
    %c0_i32_0 = arith.constant 0 : i32
    %c0_i32_1 = arith.constant 0 : i32
    return %c0_i32, %c0_i32_0 : i32, i32
  }
  func.func @transform_3(%arg0: i32) -> (i32, i32) {
    %c0_i32 = arith.constant 0 : i32
    %c0_i32_0 = arith.constant 0 : i32
    %c0_i32_1 = arith.constant 0 : i32
    return %c0_i32, %c0_i32_0 : i32, i32
  }
  func.func @transform_4(%arg0: i32) -> (i32, i32) {
    %c0_i32 = arith.constant 0 : i32
    %c0_i32_0 = arith.constant 0 : i32
    %c0_i32_1 = arith.constant 0 : i32
    return %c0_i32, %c0_i32_0 : i32, i32
  }
  func.func @transform_5(%arg0: i32) -> (i32, i32) {
    %c0_i32 = arith.constant 0 : i32
    %c0_i32_0 = arith.constant 0 : i32
    %c0_i32_1 = arith.constant 0 : i32
    return %c0_i32, %c0_i32_0 : i32, i32
  }
  func.func @transform_6(%arg0: i32) -> (i32, i32) {
    %c0_i32 = arith.constant 0 : i32
    %c0_i32_0 = arith.constant 0 : i32
    %c0_i32_1 = arith.constant 0 : i32
    return %c0_i32, %c0_i32_0 : i32, i32
  }
  func.func @transform_7(%arg0: i32) -> (i32, i32) {
    %c0_i32 = arith.constant 0 : i32
    %c0_i32_0 = arith.constant 0 : i32
    %c0_i32_1 = arith.constant 0 : i32
    return %c0_i32, %c0_i32_0 : i32, i32
  }
  func.func @transform_8(%arg0: i32) -> (i32, i32) {
    %c0_i32 = arith.constant 0 : i32
    %c0_i32_0 = arith.constant 0 : i32
    %c0_i32_1 = arith.constant 0 : i32
    return %c0_i32, %c0_i32_0 : i32, i32
  }
  func.func @transform_9(%arg0: i32) -> (i32, i32) {
    %c0_i32 = arith.constant 0 : i32
    %c0_i32_0 = arith.constant 0 : i32
    return %arg0, %c0_i32 : i32, i32
  }
}

</mosaic_0001>

<bundles_post_ra>
// kernel: tpu_custom_call.1
= control target key start
LH: loop header
LB: loop body
LE: loop exit
PB: predicated region body
PF: predicated region fallthrough
CT: control target
= control target key end

     0   :  { %14 = vsyncpa [#allocation3], 0  ;;  %s1168_s0 = inlined_call_operand.vmem [shape: bf16[64,32], index: 0, kind: input, shape index: {}]   ;;  %s1169_s1 = inlined_call_operand.vmem [shape: bf16[32,64], index: 1, kind: input, shape index: {}]   ;;  %s1170_s2 = inlined_call_operand.vmem [shape: f32[1,64], index: 2, kind: input, shape index: {}]   ;;  %s1171_s3 = inlined_call_operand.vmem [shape: bf16[64,32], index: 3, kind: input, shape index: {}]   ;;  %s1172_s4 = inlined_call_operand.vmem [shape: f32[1,32], index: 4, kind: input, shape index: {}]   ;;  %s1173_s5 = inlined_call_operand.vmem [shape: bf16[32,128], index: 5, kind: input, shape index: {}]   ;;  %s1174_s6 = inlined_call_operand.vmem [shape: f32[1,128], index: 6, kind: input, shape index: {}]   ;;  %s1175_s7 = inlined_call_operand.vmem [shape: f32[1,128], index: 7, kind: input, shape index: {}]   ;;  %s1176_s8 = inlined_call_operand.vmem [shape: f32[1,128], index: 8, kind: input, shape index: {}]   ;;  %s1177_s9 = inlined_call_operand.hbm [shape: f32[64,128], index: 9, kind: output, shape index: {}]  }
   0x1   :  { %16 = vsyncpa [#allocation3 + $0x1], 0  ;;  %s1015_s30 = smov 0   ;;  %s1017_s10 = smov 0  }
   0x2   :  { %s1019_s11 = smov 0   ;;  %s1021_s12 = smov 0  }
   0x3 LB: > { %s1036_s13 = sadd.s32 4294967295, %s960_s12   ;;  %s755_s14 = sadd.s32 4294967294, %s960_s12   ;;  %s960_s12 = sphi %s1021_s12, %s1183_s12   ;;  %s956_s11 = sphi %s1019_s11, %s1182_s11   ;;  %s952_s10 = sphi %s1017_s10, %s1181_s10   ;;  %s948_s30 = sphi %s1015_s30, %s1180_s30  }
   0x4   : > { %s1040_s15 = sadd.s32 1, %s960_s12   ;;  %s223_s16 = sadd.s32 1, %s956_s11 }
   0x5   : > { %s220_s17 = ssub.s32 %s960_s12, %s1040_s15  ;;  %p233_p0 = scmp.ne.s32.totalorder %s956_s11, %s952_s10 }
   0x6   : > { %p221_p1 = scmp.eq.s32.totalorder %s220_s17, 0  ;;  %p234_p2 = scmp.eq.s32.totalorder %s1036_s13, 1 }
   0x7   : > { %p239_p3 = scmp.ne.s32.totalorder %s952_s10, %s948_s30  ;;  %p240_p4 = scmp.eq.s32.totalorder %s755_s14, 1 }
   0x8   : > { %s1051_s18 = scalar_select %p221_p1, %s956_s11, %s223_s16  }
   0x9   : > { %p1053_p5 = por %p234_p2, %p233_p0  ;;  %p1057_p6 = por %p240_p4, %p239_p3 }
   0xa   : > { %p758_p7 = scmp.ge.s32.totalorder %s960_s12, 1  ;;  %p291_p8 = scmp.lt.s32.totalorder %s960_s12, 3 }
   0xc   : > { %p292_p9 = pnand %p758_p7, %p291_p8 }
   0xd   : > { %v872_v0 = vld [vmem:[%s1169_s1] sm:$0xff] (!%p292_p9)   ;;  %s760_s23 = sshll.u32 (!%p292_p9), %s1036_s13, 2  ;;  %v873_v1 = vld [vmem:[%s1169_s1 + $0x8] sm:$0xff] (!%p292_p9)   ;;  %vm372_vm0 = vcmask (!%p292_p9), 261120   ;;  %v878_v6 = vld [vmem:[%s1171_s3 + $0x10] sm:$0xff] (!%p292_p9)   ;;  %vm473_vm1 = vcmask (!%p292_p9), 523264  }
   0xe   : > { %295 = sbr.rel (%p292_p9) target bundleno = 1024 (0x400), region = 56  ;;  %p328_p10 = scmp.lt.s32.totalorder (!%p292_p9), %s760_s23, 7  ;;  %803 = vmatprep.subr.bf16.mxu0 (!%p292_p9), %v872_v0  ;;  %v876_v2 = vld [vmem:[%s1171_s3] sm:$0xff] (!%p292_p9)   ;;  %v877_v3 = vld [vmem:[%s1171_s3 + $0x8] sm:$0xff] (!%p292_p9)   ;;  %v879_v7 = vld [vmem:[%s1171_s3 + $0x18] sm:$0xff] (!%p292_p9)  }
   0xf   : > { %804 = vmatpush3.bf16.msra.mxu0 (!%p292_p9), %v872_v0  ;;  %811 = vmatprep.subr.bf16.mxu1 (!%p292_p9), %v876_v2  ;;  %v762_v8 = vld [vmem:[%s1170_s2] ss:$0 sm:$0xff] (!%p292_p9)  ;;  %v881_v24 = vld [vmem:[%s1173_s5 + $0x8] sm:$0xff] (!%p292_p9)   ;;  %s324_s26 = sand.u32 (!%p292_p9), 1, %s952_s10   ;;  %s788_s16 = sshll.u32 (!%p292_p9), %s1036_s13, 9 }
  0x10   : > { %805 = vmatprep.subr.bf16.mxu0 (!%p292_p9), %v873_v1  ;;  %812 = vmatpush3.bf16.msra.mxu1 (!%p292_p9), %v876_v2  ;;  %v880_v23 = vld [vmem:[%s1173_s5] sm:$0xff] (!%p292_p9)   ;;  %s759_s29 = sshll.u32 (!%p292_p9), %s324_s26, 5  ;;  %s1121_s24 = scalar_lea.hbm (!%p292_p9), %s1177_s9, %s788_s16 }
  0x11   : > { %813 = vmatprep.subr.bf16.mxu1 (!%p292_p9), %v877_v3  ;;  %v769_v25 = vld [vmem:[%s1172_s4] ss:$0 sm:$0xff] (!%p292_p9)  ;;  %s1127_s13 = scalar_lea.sflag (!%p292_p9), [#allocation3], %s324_s26  ;;  %s962_s25 = smov (!%p292_p9), [#allocation2]  }
  0x12   : > { %v776_v40 = vld [vmem:[%s1174_s6] ss:$0 sm:$0xff] (!%p292_p9)  ;;  %s902_s27 = sshll.u32 (!%p292_p9), %s962_s25, 4  ;;  %s903_s27 = int_to_ptr.vmem [resolvable:$false] %s902_s27 }
  0x13   : > { %806 = vmatpush3.bf16.msra.mxu0 (!%p292_p9), %v873_v1  ;;  %v781_v42 = vld [vmem:[%s1175_s7] ss:$0 sm:$0xff] (!%p292_p9)  ;;  %s904_s28 = scalar_lea.vmem (!%p292_p9), %s903_s27, 1024 }
  0x14   : > { %814 = vmatpush3.bf16.msra.mxu1 (!%p292_p9), %v877_v3  ;;  %823 = vmatprep.subr.bf16.mxu0 (!%p292_p9), %v880_v23 }
  0x15   : > { %s1185_s23 = smov (!%p328_p10, %s760_s23), 7  ;;  %815 = vmatprep.subr.bf16.mxu1 %v878_v6 }
  0x16   : > { %s761_s14 = sshll.u32 %s1185_s23, 2 }
  0x17   : > { %s331_s21 = scalar_lea.vmem %s1168_s0, %s761_s14  ;;  %s326_s14 = scalar_lea.vmem [#allocation2], %s759_s29 }
  0x18   : > { %v874_v4 = vld [vmem:[%s331_s21] sm:$0xff]   ;;  %v875_v5 = vld [vmem:[%s331_s21 + $0x8] sm:$0xff]   ;;  %816 = vmatpush3.bf16.msra.mxu1 %v878_v6  ;;  %s693_s17 = sshll.u32 %s326_s14, 4  ;;  %s1123_s17 = int_to_ptr.vmem [resolvable:$true] %s693_s17 }
  0x19   : > { %807 = vmatprep.mubr.msk.bf16.mxu0 %vm372_vm0, %v874_v4  ;;  %817 = vmatprep.subr.bf16.mxu1 %v879_v7  ;;  %s898_s23 = scalar_lea.vmem %s1123_s17, 512  ;;  %p905_p0 = scmp.lt.s32.totalorder %s1123_s17, %s903_s27 }
  0x1a   : > { %808 = vmatmul.mubr.msk.bf16.vlgmr.msra.gmra.mrb[0].mxu0 %vm372_vm0, %v875_v5  ;;  %p899_p11 = scmp.ne.s32.totalorder %s1123_s17, %s898_s23  ;;  %p906_p1 = scmp.lt.s32.totalorder %s904_s28, %s898_s23 }
  0x1b   : > { %824 = vmatpush3.bf16.msra.mxu0 %v880_v23 }
  0x1c   : > { %818 = vmatpush3.bf16.msra.mxu1 %v879_v7  ;;  %825 = vmatprep.subr.bf16.mxu0 %v881_v24  ;;  %p900_p12 = pnand %p899_p11, %p1053_p5  ;;  %p907_p2 = por %p906_p1, %p905_p0 }
  0x1e   : > { %p901_p13 = pneg %p900_p12 }
  0x1f   : > { %826 = vmatpush3.bf16.msra.mxu0 %v881_v24 }
  0x20   : > { %p908_p3 = pnand %p907_p2, %p901_p13 }
  0xed   : > { %v809_v9 = vpop.f32.mrb[0].mxu0 }
  0xee   : > { %v422_v10 = vadd.f32 %v809_v9, %v762_v8  ;;  %v413_v11 = vpop.f32.mrb[1].mxu0 }
  0xef   : > { %v414_v12 = vadd.f32 %v762_v8, %v413_v11  ;;  %v810_v13 = vpop.f32.mrb[2].mxu0 }
  0xf0   : > { %v425_v14 = vadd.f32 %v810_v13, %v762_v8  ;;  %v416_v15 = vpop.f32.mrb[3].mxu0  ;;  %v430_v17 = vmax.f32 %v422_v10, 0.0  ;;  %v782_v10 = vld [vmem:[%s1176_s8] ss:$0 sm:$0xff] }
  0xf1   : > { %v417_v16 = vadd.f32 %v762_v8, %v416_v15  ;;  %v428_v19 = vmax.f32 %v414_v12, 0.0 }
  0xf2   : > { %v431_v18 = vmax.f32 %v425_v14, 0.0 }
  0xf3   : > { %v429_v20 = vmax.f32 %v417_v16, 0.0 }
  0xf4   : > { %v433_v21 = vpack.c.bf16 %v431_v18, %v430_v17 }
  0xf5   : > { %v432_v22 = vpack.c.bf16 %v429_v20, %v428_v19 }
  0xf7   : > { %819 = vmatprep.mubr.msk.bf16.mxu1 %vm473_vm1, %v432_v22 }
  0xf8   : > { %820 = vmatmul.mubr.msk.bf16.vlgmr.msra.gmra.mrb[0].mxu1 %vm473_vm1, %v433_v21 }
 0x1cb   : > { %v821_v26 = vpop.f32.mrb[0].mxu1 }
 0x1cc   : > { %v523_v27 = vadd.f32 %v821_v26, %v769_v25  ;;  %v514_v28 = vpop.f32.mrb[1].mxu1 }
 0x1cd   : > { %v515_v29 = vadd.f32 %v769_v25, %v514_v28  ;;  %v822_v30 = vpop.f32.mrb[2].mxu1 }
 0x1ce   : > { %v526_v31 = vadd.f32 %v822_v30, %v769_v25  ;;  %v517_v32 = vpop.f32.mrb[3].mxu1  ;;  %v531_v34 = vmax.f32 %v523_v27, 0.0 }
 0x1cf   : > { %v518_v33 = vadd.f32 %v769_v25, %v517_v32  ;;  %v529_v36 = vmax.f32 %v515_v29, 0.0 }
 0x1d0   : > { %v532_v35 = vmax.f32 %v526_v31, 0.0 }
 0x1d1   : > { %v530_v37 = vmax.f32 %v518_v33, 0.0 }
 0x1d2   : > { %v534_v38 = vpack.c.bf16 %v532_v35, %v531_v34 }
 0x1d3   : > { %v533_v39 = vpack.c.bf16 %v530_v37, %v529_v36 }
 0x1d5   : > { %827 = vmatprep.mubr.msk.bf16.mxu0 %vm372_vm0, %v533_v39 }
 0x1d6   : > { %828 = vmatmul.mubr.msk.bf16.vlgmr.msra.gmra.mrb[4].mxu0 %vm372_vm0, %v534_v38 }
 0x2a9   : > { %v829_v41 = vpop.f32.mrb[4].mxu0 }
 0x2aa   : > { %v609_v43 = vadd.f32 %v829_v41, %v776_v40  ;;  %v600_v44 = vpop.f32.mrb[5].mxu0 }
 0x2ab   : > { %v601_v45 = vadd.f32 %v776_v40, %v600_v44  ;;  %v830_v46 = vpop.f32.mrb[6].mxu0 }
 0x2ac   : > { %v1107_v47 = vadd.f32 %v830_v46, %v776_v40  ;;  %v603_v48 = vpop.f32.mrb[7].mxu0  ;;  %v623_v49 = vadd.f32 %v781_v42, %v609_v43  ;;  %v669_v19 = vmul.f32 %v782_v10, %v609_v43 }
 0x2ad   : > { %v604_v50 = vadd.f32 %v776_v40, %v603_v48  ;;  %v621_v51 = vadd.f32 %v781_v42, %v601_v45  ;;  %v667_v12 = vmul.f32 %v782_v10, %v601_v45 }
 0x2ae   : > { %629 = vmax.xlane.f32.xlu1 %v623_v49  ;;  %v624_v52 = vadd.f32 %v781_v42, %v1107_v47  ;;  %v670_v24 = vmul.f32 %v782_v10, %v1107_v47 }
 0x2af   : > { %625 = vmax.xlane.f32.xlu0 %v621_v51  ;;  %v622_v53 = vadd.f32 %v781_v42, %v604_v50  ;;  %v668_v17 = vmul.f32 %v782_v10, %v604_v50 }
 0x2b2   : > { %631 = vmax.xlane.f32.xlu1 %v624_v52 }
 0x2b3   : > { %627 = vmax.xlane.f32.xlu0 %v622_v53 }
 0x33b   : > { %v630_v54 = vpop.xlane.xlu1 %629 }
 0x33c   : > { %v635_v55 = vsub.f32 %v623_v49, %v630_v54  ;;  %v626_v56 = vpop.xlane.xlu0 %625 }
 0x33d   : > { %v633_v57 = vsub.f32 %v621_v51, %v626_v56 }
 0x33e   : > { %v641_v60 = vmul.f32 1.442695, %v635_v55 }
 0x33f   : > { %v637_v58 = vmul.f32 1.442695, %v633_v57  ;;  %v632_v59 = vpop.xlane.xlu1 %631 }
 0x340   : > { %v628_v61 = vpop.xlane.xlu0 %627  ;;  %v636_v62 = vsub.f32 %v624_v52, %v632_v59 }
 0x341   : > { %882 = vpow2.f32 %v637_v58  ;;  %v634_v63 = vsub.f32 %v622_v53, %v628_v61 }
 0x342   : > { %884 = vpow2.f32 %v641_v60  ;;  %v643_v1 = vmul.f32 1.442695, %v636_v62 }
 0x343   : > { %v639_v0 = vmul.f32 1.442695, %v634_v63 }
 0x345   : > { %886 = vpow2.f32 %v639_v0 }
 0x346   : > { %888 = vpow2.f32 %v643_v1 }
 0x34b   : > { %v883_v2 = vpop.eup %882 }
 0x34c   : > { %645 = vadd.xlane.f32.xlu0 %v883_v2  ;;  %v885_v3 = vpop.eup %884 }
 0x34f   : > { %v887_v4 = vpop.eup %886 }
 0x350   : > { %649 = vadd.xlane.f32.xlu0 %v885_v3  ;;  %647 = vadd.xlane.f32.xlu1 %v887_v4  ;;  %v889_v5 = vpop.eup %888 }
 0x354   : > { %651 = vadd.xlane.f32.xlu1 %v889_v5 }
 0x3d9   : > { %v646_v6 = vpop.xlane.xlu0 %645 }
 0x3da   : > { %890 = vrcp.f32 %v646_v6 }
 0x3dd   : > { %v648_v7 = vpop.xlane.xlu1 %647  ;;  %v650_v8 = vpop.xlane.xlu0 %649 }
 0x3de   : > { %892 = vrcp.f32 %v648_v7 }
 0x3df   : > { %894 = vrcp.f32 %v650_v8 }
 0x3e1   : > { %v652_v9 = vpop.xlane.xlu1 %651 }
 0x3e2   : > { %896 = vrcp.f32 %v652_v9 }
 0x3e4   : > { %v891_v11 = vpop.eup %890 }
 0x3e5   : > { %v657_v13 = vmul.f32 %v891_v11, %v883_v2 }
 0x3e7   : > { %v671_v14 = vadd.f32 %v667_v12, %v657_v13 }
 0x3e8   : > { %v893_v15 = vpop.eup %892 }
 0x3e9   : > { %v895_v16 = vpop.eup %894  ;;  %675 = vst [vmem:[%s326_s14] sm:$0xff] %v671_v14  ;;  %v658_v18 = vmul.f32 %v893_v15, %v887_v4 }
 0x3ea   : > { %v659_v20 = vmul.f32 %v895_v16, %v885_v3 }
 0x3eb   : > { %v672_v21 = vadd.f32 %v668_v17, %v658_v18 }
 0x3ec   : > { %v897_v22 = vpop.eup %896  ;;  %v673_v23 = vadd.f32 %v669_v19, %v659_v20 }
 0x3ed   : > { %676 = vst [vmem:[%s326_s14 + $0x8] sm:$0xff] %v672_v21  ;;  %v660_v25 = vmul.f32 %v897_v22, %v889_v5 }
 0x3ee   : > { %677 = vst [vmem:[%s326_s14 + $0x10] sm:$0xff] %v673_v23 }
 0x3ef   : > { %v674_v26 = vadd.f32 %v670_v24, %v660_v25 }
 0x3f1   : > { %678 = vst [vmem:[%s326_s14 + $0x18] sm:$0xff] %v674_v26 }
 0x3f2   : > { %911 = shalt.err (!%p908_p3)
}
 0x3f3   : > { %s912_s26 = scalar_lea.hbm %s1121_s24, 512  ;;  %s916_s16 = scalar_lea.hbm %s1177_s9, 1024 }
 0x3f4   : > { %p913_p4 = scmp.ne.s32.totalorder %s1121_s24, %s912_s26  ;;  %p917_p9 = scmp.lt.u32.totalorder %s1121_s24, %s1177_s9 }
 0x3f5   : > { %p918_p10 = scmp.lt.u32.totalorder %s916_s16, %s912_s26  ;;  %p920_p12 = scmp.lt.u32.totalorder %s912_s26, %s1121_s24 }
 0x3f6   : > { %p914_p7 = pnand %p913_p4, %p1053_p5 }
 0x3f7   : > { %p919_p11 = por %p918_p10, %p917_p9 }
 0x3f8   : > { %p915_p8 = pneg %p914_p7 }
 0x3f9   : > { %p921_p13 = por %p920_p12, %p919_p11 }
 0x3fb   : > { %p922_p0 = pnand %p921_p13, %p915_p8 }
 0x3fd   : > { %925 = shalt.err (!%p922_p0)
}
 0x3fe   : > { %s963_s23 = smov 128   ;;  %s964_s25 = smov 8  }
 0x3ff   : > { %831 = dma.vmem_to_hbm [thread:$0]  (%p1053_p5), %s1123_s17, 512, %s1121_s24, %s1127_s13, %s963_s23, %s963_s23, %s964_s25  }
 0x400 PF: > { %p837_p1 = scmp.ge.s32.totalorder %s960_s12, 2  ;;  %s708_s27 = sand.u32 1, %s948_s30  }
 0x401   : > { %s709_s28 = scalar_lea.sflag [#allocation3], %s708_s27 }
 0x402   : > { %p834_p2 = pnand %p837_p1, %p1057_p6 }
 0x404   : > { %943 = dma.done.wait (!%p834_p2), %s709_s28, 512  }
 0x405   : > { %945 = vsyncadd (!%p834_p2), %s709_s28, 4294966784  ;;  %p19_p3 = scmp.ge.s32.totalorder %s1040_s15, 4   ;;  %s1180_s30 = smov %s952_s10 }
 0x406   : > { %s1181_s10 = smov %s956_s11  ;;  %s1182_s11 = smov %s1051_s18 }
 0x407   : > { %s1183_s12 = smov %s1040_s15  ;;  %21 = sbr.rel (!%p19_p3) target bundleno = 3 (0x3), region = 91 }
 0x40e   :  { %714 = vsyncpa [#allocation3], 1 }
 0x40f   :  { %716 = vsyncpa [#allocation3 + $0x1], 1 }

</bundles_post_ra>
